<compile_context>
chip_gen: v7x
topology: tpu7x:2x2x1
jax: 0.10.0
libtpu: 0.0.40
codegen_flags: <defaults>
</compile_context>

<pallas_src>
import jax
import jax.numpy as jnp
from jax import lax
from jax.experimental import pallas as pl
from jax.experimental.pallas import tpu as pltpu

EMBED_DIM = 16
NUM_HEADS = 1          # TODO(synk): multi-head (num_heads>1) head split not implemented; module default is 1
FFWD_DIMS = (16, 16)   # must satisfy ffwd_dims[-1] == embed_dim for the PyTorch forward to be well-defined
NEG_INF = -1e30
LN_EPS = 1e-5
TB_MAX = 32            # max batch elements folded into one grid step (TB*J == 256 flat MXU rows)

PARAM_NAMES = ["wq", "wk", "wv", "wo", "w1", "w2",
               "bq", "bk", "bv", "bo", "bias_k", "bias_v",
               "g_an", "b_an", "b1", "g_l1", "b_l1", "b2", "g_l2", "b_l2",
               "g_pf", "b_pf"]


def _layer_norm(x, g, b):
    mu = jnp.mean(x, axis=-1, keepdims=True)
    var = jnp.mean((x - mu) ** 2, axis=-1, keepdims=True)
    return (x - mu) * lax.rsqrt(var + LN_EPS) * g + b


def _round_up(n, m):
    return -(-n // m) * m


def pack_params(params):
    """Stack all parameters into a single (R, W) f32 slab. Each param is 8-row aligned
    so in-kernel static slices stay sublane-aligned. Returns (slab, layout) where
    layout[name] = (row_offset, n_rows, n_cols)."""
    W = max(params[n].shape[1] for n in PARAM_NAMES)
    blocks, layout, off = [], {}, 0
    for n in PARAM_NAMES:
        p = params[n].astype(jnp.float32)
        r, c = p.shape
        r_pad = _round_up(r, 8)
        layout[n] = (off, r, c)
        blocks.append(jnp.zeros((r_pad, W), jnp.float32).at[:r, :c].set(p))
        off += r_pad
    return jnp.concatenate(blocks, axis=0), layout


def _make_kernel(layout, TB, J, E, F2):
    TBJ = TB * J

    def kernel(q_ref, k_ref, v_ref, am_ref, kpm_ref, slab_ref, o_ref):
        f32 = jnp.float32

        def P(name):  # static slab slice -> (rows, cols) view of one parameter
            off, r, c = layout[name]
            v = slab_ref[pl.ds(off, r), :]
            return v if c == v.shape[1] else v[:, :c]

        # Flattened (TB*J, E) views: projections + FFN fill TB*J MXU rows per matmul.
        Q2 = q_ref[...].reshape(TBJ, E)
        K2 = k_ref[...].reshape(TBJ, E)
        V2 = v_ref[...].reshape(TBJ, E)

        # --- in-projections (2-D); softmax scale is pre-folded into wq/bq ---
        q2 = jnp.dot(Q2, P("wq"), preferred_element_type=f32) + P("bq")
        k2 = jnp.dot(K2, P("wk"), preferred_element_type=f32) + P("bk")
        v2 = jnp.dot(V2, P("wv"), preferred_element_type=f32) + P("bv")

        # scores against the appended (never-masked) bias_k position
        s_bias = jnp.dot(q2, P("bias_k").T, preferred_element_type=f32)   # (TBJ, 1)

        # --- batched attention core (only part needing the batch structure) ---
        q3 = q2.reshape(TB, J, E)
        k3 = k2.reshape(TB, J, E)
        v3 = v2.reshape(TB, J, E)
        # build the additive mask in-kernel: (1,J,J) float attn_mask + (TB,1,J) key pad bias
        mask = am_ref[...][None, :, :] + kpm_ref[...]                      # (TB, J, J)
        s_main = jnp.einsum("bqd,bkd->bqk", q3, k3,
                            preferred_element_type=f32) + mask             # (TB, J, J)
        sb3 = s_bias.reshape(TB, J, 1)

        # softmax over the logical concat [k ; bias_k] without materializing the concat
        m = jnp.maximum(jnp.max(s_main, axis=-1, keepdims=True), sb3)
        p_main = jnp.exp(s_main - m)
        p_bias = jnp.exp(sb3 - m)
        denom = jnp.sum(p_main, axis=-1, keepdims=True) + p_bias
        ctx3 = (jnp.einsum("bqk,bkd->bqd", p_main, v3, preferred_element_type=f32)
                + p_bias * P("bias_v"))
        ctx3 = ctx3 * pl.reciprocal(denom, approx=True)                    # EUP divide
        # (attention dropout skipped: eval mode)

        # --- back to flat 2-D for out-proj, residual, norms, FFN ---
        ctx2 = ctx3.reshape(TBJ, E)
        attn_out = jnp.dot(ctx2, P("wo"), preferred_element_type=f32) + P("bo")

        x = _layer_norm(attn_out + V2, P("g_an"), P("b_an"))               # residual + post-attn LN
        res = x

        h = jnp.dot(x, P("w1"), preferred_element_type=f32) + P("b1")
        h = jnp.maximum(_layer_norm(h, P("g_l1"), P("b_l1")), 0.0)
        h = jnp.dot(h, P("w2"), preferred_element_type=f32) + P("b2")
        h = jnp.maximum(_layer_norm(h, P("g_l2"), P("b_l2")), 0.0)

        h = _layer_norm(h + res, P("g_pf"), P("b_pf"))                     # ffwd residual + post-ffwd LN
        o_ref[...] = h.reshape(TB, J, F2).astype(o_ref.dtype)

    return kernel


def attn_block_forward(Q, K, V, key_padding_mask, attn_mask, params):
    B, J, E = Q.shape
    F2 = params["w2"].shape[1]
    assert NUM_HEADS == 1, "head split not implemented"
    assert F2 == E, "PyTorch forward requires ffwd_dims[-1] == embed_dim"

    # Batch folding: TB batches per grid step; keep >=2 grid steps when B > 1 so both
    # TensorCores get work on v7x (single step is fine on v5e/v6e with 1 TC).
    if B <= 1:
        num_blocks, TB = 1, max(B, 1)
    else:
        num_blocks = max(2, pl.cdiv(B, TB_MAX))
        TB = pl.cdiv(B, num_blocks)
        num_blocks = pl.cdiv(B, TB)
    B_pad = num_blocks * TB

    # key padding mask -> tiny per-key additive bias (B,1,J); the appended bias_kv column
    # is never masked in PyTorch (padded with False/0), so no extra column is needed.
    kpm_add = jnp.where(key_padding_mask, NEG_INF, 0.0).astype(jnp.float32)[:, None, :]
    am = attn_mask.astype(jnp.float32)

    if B_pad != B:
        pad = B_pad - B
        Q = jnp.pad(Q, ((0, pad), (0, 0), (0, 0)))
        K = jnp.pad(K, ((0, pad), (0, 0), (0, 0)))
        V = jnp.pad(V, ((0, pad), (0, 0), (0, 0)))
        kpm_add = jnp.pad(kpm_add, ((0, pad), (0, 0), (0, 0)))

    # Fold the softmax scale into the query projection once (host-side, tiny tensors):
    # (Q @ wq + bq) * scale == Q @ (wq*scale) + (bq*scale). Saves a per-step VPU mul.
    head_dim = E // NUM_HEADS
    scale = 1.0 / (float(head_dim) ** 0.5)
    p_fold = dict(params)
    p_fold["wq"] = params["wq"] * scale
    p_fold["bq"] = params["bq"] * scale

    slab, layout = pack_params(p_fold)
    kernel = _make_kernel(layout, TB, J, E, F2)

    out = pl.pallas_call(
        kernel,
        out_shape=jax.ShapeDtypeStruct((B_pad, J, F2), jnp.float32),
        grid=(num_blocks,),
        in_specs=[
            pl.BlockSpec((TB, J, E), lambda b: (b, 0, 0)),      # Q
            pl.BlockSpec((TB, J, E), lambda b: (b, 0, 0)),      # K
            pl.BlockSpec((TB, J, E), lambda b: (b, 0, 0)),      # V
            pl.BlockSpec((J, J), lambda b: (0, 0)),             # attn_mask (shared, fetched once)
            pl.BlockSpec((TB, 1, J), lambda b: (b, 0, 0)),      # key-padding additive bias
            pl.BlockSpec(slab.shape, lambda b: (0, 0)),         # packed parameter slab (resident)
        ],
        out_specs=pl.BlockSpec((TB, J, F2), lambda b: (b, 0, 0)),
        compiler_params=pltpu.CompilerParams(dimension_semantics=("parallel",)),
    )(Q, K, V, am, kpm_add, slab)
    return out[:B]


def init_params(key, embed_dim=EMBED_DIM, ffwd_dims=FFWD_DIMS):
    E = embed_dim
    F1, F2 = ffwd_dims
    ks = jax.random.split(key, 14)

    def w(k, shape, scale=0.1):
        return jax.random.normal(k, shape, jnp.float32) * scale

    return dict(
        wq=w(ks[0], (E, E)), bq=w(ks[1], (1, E)),
        wk=w(ks[2], (E, E)), bk=w(ks[3], (1, E)),
        wv=w(ks[4], (E, E)), bv=w(ks[5], (1, E)),
        bias_k=w(ks[6], (1, E)), bias_v=w(ks[7], (1, E)),
        wo=w(ks[8], (E, E)), bo=w(ks[9], (1, E)),
        g_an=jnp.ones((1, E), jnp.float32), b_an=jnp.zeros((1, E), jnp.float32),
        w1=w(ks[10], (E, F1)), b1=w(ks[11], (1, F1)),
        g_l1=jnp.ones((1, F1), jnp.float32), b_l1=jnp.zeros((1, F1), jnp.float32),
        w2=w(ks[12], (F1, F2)), b2=w(ks[13], (1, F2)),
        g_l2=jnp.ones((1, F2), jnp.float32), b_l2=jnp.zeros((1, F2), jnp.float32),
        g_pf=jnp.ones((1, F2), jnp.float32), b_pf=jnp.zeros((1, F2), jnp.float32),
    )


def reference_forward(Q, K, V, key_padding_mask, attn_mask, params):
    """Pure-JAX reference mirroring the PyTorch forward (eval mode)."""
    p = params
    B, J, E = Q.shape
    q = Q @ p["wq"] + p["bq"]
    k = K @ p["wk"] + p["bk"]
    v = V @ p["wv"] + p["bv"]
    k = jnp.concatenate([k, jnp.broadcast_to(p["bias_k"][None], (B, 1, E))], axis=1)
    v = jnp.concatenate([v, jnp.broadcast_to(p["bias_v"][None], (B, 1, E))], axis=1)
    head_dim = E // NUM_HEADS
    s = jnp.einsum("bqd,bkd->bqk", q / jnp.sqrt(float(head_dim)), k)
    am = jnp.pad(attn_mask.astype(jnp.float32), ((0, 0), (0, 1)))
    kpm = jnp.pad(key_padding_mask, ((0, 0), (0, 1)))
    s = s + am[None] + jnp.where(kpm[:, None, :], NEG_INF, 0.0)
    a = jax.nn.softmax(s, axis=-1)
    ctx = jnp.einsum("bqk,bkd->bqd", a, v)
    attn_out = ctx @ p["wo"] + p["bo"]
    x = _layer_norm(attn_out + V, p["g_an"], p["b_an"])
    res = x
    h = jnp.maximum(_layer_norm(x @ p["w1"] + p["b1"], p["g_l1"], p["b_l1"]), 0.0)
    h = jnp.maximum(_layer_norm(h @ p["w2"] + p["b2"], p["g_l2"], p["b_l2"]), 0.0)
    return _layer_norm(h + res, p["g_pf"], p["b_pf"])


if __name__ == "__main__":
    key = jax.random.PRNGKey(0)
    kp, kq, kk, kv, km = jax.random.split(key, 5)

    B, J, E = 2, 8, EMBED_DIM
    params = init_params(kp)
    Q = jax.random.normal(kq, (B, J, E), jnp.float32)
    K = jax.random.normal(kk, (B, J, E), jnp.float32)
    V = jax.random.normal(kv, (B, J, E), jnp.float32)
    attn_mask = jax.random.normal(km, (J, J), jnp.float32) * 0.5          # float additive mask
    key_padding_mask = jnp.zeros((B, J), jnp.bool_).at[1, -2:].set(True)  # True = padded key

    out = attn_block_forward(Q, K, V, key_padding_mask, attn_mask, params)
    out = jax.block_until_ready(out)

    ref = reference_forward(Q, K, V, key_padding_mask, attn_mask, params)
    assert out.shape == (B, J, FFWD_DIMS[-1]), out.shape
    # tolerance loosened slightly for the approx-EUP reciprocal in the softmax denom
    assert jnp.allclose(out, ref, atol=5e-3, rtol=5e-3), float(jnp.max(jnp.abs(out - ref)))
    print("KERNEL_OK")
</pallas_src>

<mosaic_0001>
module attributes {stable_mosaic.version = 11 : i64} {
  func.func @kernel(%arg0: i32, %arg1: memref<1x8x16xf32, #tpu.memory_space<vmem>>, %arg2: memref<1x8x16xf32, #tpu.memory_space<vmem>>, %arg3: memref<1x8x16xf32, #tpu.memory_space<vmem>>, %arg4: memref<8x8xf32, #tpu.memory_space<vmem>>, %arg5: memref<1x1x8xf32, #tpu.memory_space<vmem>>, %arg6: memref<224x16xf32, #tpu.memory_space<vmem>>, %arg7: memref<1x8x16xf32, #tpu.memory_space<vmem>>) attributes {dimension_semantics = [#tpu.dimension_semantics<parallel>], iteration_bounds = array<i64: 2>, scalar_prefetch = 0 : i64, scratch_operands = 0 : i64, tpu.core_type = #tpu.core_type<tc>, window_params = [{transform_indices = @transform_0, window_bounds = array<i64: 1, 8, 16>}, {transform_indices = @transform_1, window_bounds = array<i64: 1, 8, 16>}, {transform_indices = @transform_2, window_bounds = array<i64: 1, 8, 16>}, {pipeline_mode = #tpu.pipeline_mode<synchronous>, transform_indices = @transform_3, window_bounds = array<i64: 8, 8>}, {transform_indices = @transform_4, window_bounds = array<i64: 1, 1, 8>}, {pipeline_mode = #tpu.pipeline_mode<synchronous>, transform_indices = @transform_5, window_bounds = array<i64: 224, 16>}, {transform_indices = @transform_6, window_bounds = array<i64: 1, 8, 16>}]} {
    %c0 = arith.constant 0 : index
    %c0_0 = arith.constant 0 : index
    %c0_1 = arith.constant 0 : index
    %0 = vector.load %arg1[%c0, %c0_0, %c0_1] : memref<1x8x16xf32, #tpu.memory_space<vmem>>, vector<1x8x16xf32>
    %1 = vector.shape_cast %0 : vector<1x8x16xf32> to vector<8x16xf32>
    %c0_2 = arith.constant 0 : index
    %c0_3 = arith.constant 0 : index
    %c0_4 = arith.constant 0 : index
    %2 = vector.load %arg2[%c0_2, %c0_3, %c0_4] : memref<1x8x16xf32, #tpu.memory_space<vmem>>, vector<1x8x16xf32>
    %3 = vector.shape_cast %2 : vector<1x8x16xf32> to vector<8x16xf32>
    %c0_5 = arith.constant 0 : index
    %c0_6 = arith.constant 0 : index
    %c0_7 = arith.constant 0 : index
    %4 = vector.load %arg3[%c0_5, %c0_6, %c0_7] : memref<1x8x16xf32, #tpu.memory_space<vmem>>, vector<1x8x16xf32>
    %5 = vector.shape_cast %4 : vector<1x8x16xf32> to vector<8x16xf32>
    %c0_8 = arith.constant 0 : index
    %c0_9 = arith.constant 0 : index
    %6 = vector.load %arg6[%c0_8, %c0_9] : memref<224x16xf32, #tpu.memory_space<vmem>>, vector<16x16xf32>
    %cst = arith.constant dense<0.000000e+00> : vector<8x16xf32>
    %7 = tpu.matmul %1, %6, %cst {dimension_numbers = #tpu.dot_dimension_numbers<[1], [0], [0], [1], [0, 0, 1, 1], [], []>} : vector<8x16xf32>, vector<16x16xf32>, vector<8x16xf32> -> vector<8x16xf32>
    %c96 = arith.constant 96 : index
    %c0_10 = arith.constant 0 : index
    %8 = vector.load %arg6[%c96, %c0_10] : memref<224x16xf32, #tpu.memory_space<vmem>>, vector<1x16xf32>
    %9 = vector.broadcast %8 : vector<1x16xf32> to vector<8x16xf32>
    %10 = arith.addf %7, %9 : vector<8x16xf32>
    %c16 = arith.constant 16 : index
    %c0_11 = arith.constant 0 : index
    %11 = vector.load %arg6[%c16, %c0_11] : memref<224x16xf32, #tpu.memory_space<vmem>>, vector<16x16xf32>
    %cst_12 = arith.constant dense<0.000000e+00> : vector<8x16xf32>
    %12 = tpu.matmul %3, %11, %cst_12 {dimension_numbers = #tpu.dot_dimension_numbers<[1], [0], [0], [1], [0, 0, 1, 1], [], []>} : vector<8x16xf32>, vector<16x16xf32>, vector<8x16xf32> -> vector<8x16xf32>
    %c104 = arith.constant 104 : index
    %c0_13 = arith.constant 0 : index
    %13 = vector.load %arg6[%c104, %c0_13] : memref<224x16xf32, #tpu.memory_space<vmem>>, vector<1x16xf32>
    %14 = vector.broadcast %13 : vector<1x16xf32> to vector<8x16xf32>
    %15 = arith.addf %12, %14 : vector<8x16xf32>
    %c32 = arith.constant 32 : index
    %c0_14 = arith.constant 0 : index
    %16 = vector.load %arg6[%c32, %c0_14] : memref<224x16xf32, #tpu.memory_space<vmem>>, vector<16x16xf32>
    %cst_15 = arith.constant dense<0.000000e+00> : vector<8x16xf32>
    %17 = tpu.matmul %5, %16, %cst_15 {dimension_numbers = #tpu.dot_dimension_numbers<[1], [0], [0], [1], [0, 0, 1, 1], [], []>} : vector<8x16xf32>, vector<16x16xf32>, vector<8x16xf32> -> vector<8x16xf32>
    %c112 = arith.constant 112 : index
    %c0_16 = arith.constant 0 : index
    %18 = vector.load %arg6[%c112, %c0_16] : memref<224x16xf32, #tpu.memory_space<vmem>>, vector<1x16xf32>
    %19 = vector.broadcast %18 : vector<1x16xf32> to vector<8x16xf32>
    %20 = arith.addf %17, %19 : vector<8x16xf32>
    %c128 = arith.constant 128 : index
    %c0_17 = arith.constant 0 : index
    %21 = vector.load %arg6[%c128, %c0_17] : memref<224x16xf32, #tpu.memory_space<vmem>>, vector<1x16xf32>
    %22 = tpu.transpose %21, [1, 0] : vector<1x16xf32> -> vector<16x1xf32>
    %cst_18 = arith.constant dense<0.000000e+00> : vector<8x1xf32>
    %23 = tpu.matmul %10, %22, %cst_18 {dimension_numbers = #tpu.dot_dimension_numbers<[1], [0], [0], [1], [0, 0, 1, 1], [], []>} : vector<8x16xf32>, vector<16x1xf32>, vector<8x1xf32> -> vector<8x1xf32>
    %24 = vector.shape_cast %10 : vector<8x16xf32> to vector<1x8x16xf32>
    %25 = vector.shape_cast %15 : vector<8x16xf32> to vector<1x8x16xf32>
    %26 = vector.shape_cast %20 : vector<8x16xf32> to vector<1x8x16xf32>
    %c0_19 = arith.constant 0 : index
    %c0_20 = arith.constant 0 : index
    %27 = vector.load %arg4[%c0_19, %c0_20] : memref<8x8xf32, #tpu.memory_space<vmem>>, vector<8x8xf32>
    %28 = vector.shape_cast %27 : vector<8x8xf32> to vector<1x8x8xf32>
    %c0_21 = arith.constant 0 : index
    %c0_22 = arith.constant 0 : index
    %c0_23 = arith.constant 0 : index
    %29 = vector.load %arg5[%c0_21, %c0_22, %c0_23] : memref<1x1x8xf32, #tpu.memory_space<vmem>>, vector<1x1x8xf32>
    %30 = vector.broadcast %29 : vector<1x1x8xf32> to vector<1x8x8xf32>
    %31 = arith.addf %28, %30 : vector<1x8x8xf32>
    "tpu.trace_start"() <{level = 10 : i32, message = "bqd,bkd->bqk"}> : () -> ()
    %cst_24 = arith.constant dense<0.000000e+00> : vector<1x8x8xf32>
    %32 = tpu.matmul %24, %25, %cst_24 {dimension_numbers = #tpu.dot_dimension_numbers<[2], [2], [1], [1], [0, 0, 0, 1, 1, 1], [0], [0]>} : vector<1x8x16xf32>, vector<1x8x16xf32>, vector<1x8x8xf32> -> vector<1x8x8xf32>
    "tpu.trace_stop"() : () -> ()
    %33 = arith.addf %32, %31 : vector<1x8x8xf32>
    %34 = vector.shape_cast %23 : vector<8x1xf32> to vector<1x8x1xf32>
    %cst_25 = arith.constant dense<0xFF800000> : vector<1x8xf32>
    %35 = vector.multi_reduction <maximumf>, %33, %cst_25 [2] : vector<1x8x8xf32> to vector<1x8xf32>
    %36 = vector.shape_cast %35 : vector<1x8xf32> to vector<1x8x1xf32>
    %37 = arith.maximumf %36, %34 : vector<1x8x1xf32>
    %38 = vector.broadcast %37 : vector<1x8x1xf32> to vector<1x8x8xf32>
    %39 = arith.subf %33, %38 : vector<1x8x8xf32>
    %40 = math.exp %39 : vector<1x8x8xf32>
    %41 = arith.subf %34, %37 : vector<1x8x1xf32>
    %42 = math.exp %41 : vector<1x8x1xf32>
    %cst_26 = arith.constant dense<0.000000e+00> : vector<1x8xf32>
    %43 = vector.multi_reduction <add>, %40, %cst_26 [2] : vector<1x8x8xf32> to vector<1x8xf32>
    %44 = vector.shape_cast %43 : vector<1x8xf32> to vector<1x8x1xf32>
    %45 = arith.addf %44, %42 : vector<1x8x1xf32>
    "tpu.trace_start"() <{level = 10 : i32, message = "bqk,bkd->bqd"}> : () -> ()
    %cst_27 = arith.constant dense<0.000000e+00> : vector<1x8x16xf32>
    %46 = tpu.matmul %40, %26, %cst_27 {dimension_numbers = #tpu.dot_dimension_numbers<[2], [1], [1], [2], [0, 0, 0, 1, 1, 2], [0], [0]>} : vector<1x8x8xf32>, vector<1x8x16xf32>, vector<1x8x16xf32> -> vector<1x8x16xf32>
    "tpu.trace_stop"() : () -> ()
    %c136 = arith.constant 136 : index
    %c0_28 = arith.constant 0 : index
    %47 = vector.load %arg6[%c136, %c0_28] : memref<224x16xf32, #tpu.memory_space<vmem>>, vector<1x16xf32>
    %48 = vector.shape_cast %47 : vector<1x16xf32> to vector<1x1x16xf32>
    %49 = vector.broadcast %42 : vector<1x8x1xf32> to vector<1x8x16xf32>
    %50 = vector.broadcast %48 : vector<1x1x16xf32> to vector<1x8x16xf32>
    %51 = arith.mulf %49, %50 : vector<1x8x16xf32>
    %52 = arith.addf %46, %51 : vector<1x8x16xf32>
    %53 = tpu.reciprocal %45 {approx = true} : vector<1x8x1xf32> -> vector<1x8x1xf32>
    %54 = vector.broadcast %53 : vector<1x8x1xf32> to vector<1x8x16xf32>
    %55 = arith.mulf %52, %54 : vector<1x8x16xf32>
    %56 = vector.shape_cast %55 : vector<1x8x16xf32> to vector<8x16xf32>
    %c48 = arith.constant 48 : index
    %c0_29 = arith.constant 0 : index
    %57 = vector.load %arg6[%c48, %c0_29] : memref<224x16xf32, #tpu.memory_space<vmem>>, vector<16x16xf32>
    %cst_30 = arith.constant dense<0.000000e+00> : vector<8x16xf32>
    %58 = tpu.matmul %56, %57, %cst_30 {dimension_numbers = #tpu.dot_dimension_numbers<[1], [0], [0], [1], [0, 0, 1, 1], [], []>} : vector<8x16xf32>, vector<16x16xf32>, vector<8x16xf32> -> vector<8x16xf32>
    %c120 = arith.constant 120 : index
    %c0_31 = arith.constant 0 : index
    %59 = vector.load %arg6[%c120, %c0_31] : memref<224x16xf32, #tpu.memory_space<vmem>>, vector<1x16xf32>
    %60 = vector.broadcast %59 : vector<1x16xf32> to vector<8x16xf32>
    %61 = arith.addf %58, %60 : vector<8x16xf32>
    %62 = arith.addf %61, %5 : vector<8x16xf32>
    %c144 = arith.constant 144 : index
    %c0_32 = arith.constant 0 : index
    %63 = vector.load %arg6[%c144, %c0_32] : memref<224x16xf32, #tpu.memory_space<vmem>>, vector<1x16xf32>
    %c152 = arith.constant 152 : index
    %c0_33 = arith.constant 0 : index
    %64 = vector.load %arg6[%c152, %c0_33] : memref<224x16xf32, #tpu.memory_space<vmem>>, vector<1x16xf32>
    %cst_34 = arith.constant dense<0.000000e+00> : vector<8xf32>
    %65 = vector.multi_reduction <add>, %62, %cst_34 [1] : vector<8x16xf32> to vector<8xf32>
    %66 = vector.shape_cast %65 : vector<8xf32> to vector<8x1xf32>
    %cst_35 = arith.constant 1.600000e+01 : f32
    %67 = vector.broadcast %cst_35 : f32 to vector<8x1xf32>
    %68 = arith.divf %66, %67 : vector<8x1xf32>
    %69 = vector.broadcast %68 : vector<8x1xf32> to vector<8x16xf32>
    %70 = arith.subf %62, %69 : vector<8x16xf32>
    %71 = arith.mulf %70, %70 : vector<8x16xf32>
    %cst_36 = arith.constant dense<0.000000e+00> : vector<8xf32>
    %72 = vector.multi_reduction <add>, %71, %cst_36 [1] : vector<8x16xf32> to vector<8xf32>
    %73 = vector.shape_cast %72 : vector<8xf32> to vector<8x1xf32>
    %cst_37 = arith.constant 1.600000e+01 : f32
    %74 = vector.broadcast %cst_37 : f32 to vector<8x1xf32>
    %75 = arith.divf %73, %74 : vector<8x1xf32>
    %76 = vector.broadcast %68 : vector<8x1xf32> to vector<8x16xf32>
    %77 = arith.subf %62, %76 : vector<8x16xf32>
    %cst_38 = arith.constant 9.99999974E-6 : f32
    %78 = vector.broadcast %cst_38 : f32 to vector<8x1xf32>
    %79 = arith.addf %75, %78 : vector<8x1xf32>
    %80 = math.rsqrt %79 : vector<8x1xf32>
    %81 = vector.broadcast %80 : vector<8x1xf32> to vector<8x16xf32>
    %82 = arith.mulf %77, %81 : vector<8x16xf32>
    %83 = vector.broadcast %63 : vector<1x16xf32> to vector<8x16xf32>
    %84 = arith.mulf %82, %83 : vector<8x16xf32>
    %85 = vector.broadcast %64 : vector<1x16xf32> to vector<8x16xf32>
    %86 = arith.addf %84, %85 : vector<8x16xf32>
    %c64 = arith.constant 64 : index
    %c0_39 = arith.constant 0 : index
    %87 = vector.load %arg6[%c64, %c0_39] : memref<224x16xf32, #tpu.memory_space<vmem>>, vector<16x16xf32>
    %cst_40 = arith.constant dense<0.000000e+00> : vector<8x16xf32>
    %88 = tpu.matmul %86, %87, %cst_40 {dimension_numbers = #tpu.dot_dimension_numbers<[1], [0], [0], [1], [0, 0, 1, 1], [], []>} : vector<8x16xf32>, vector<16x16xf32>, vector<8x16xf32> -> vector<8x16xf32>
    %c160 = arith.constant 160 : index
    %c0_41 = arith.constant 0 : index
    %89 = vector.load %arg6[%c160, %c0_41] : memref<224x16xf32, #tpu.memory_space<vmem>>, vector<1x16xf32>
    %90 = vector.broadcast %89 : vector<1x16xf32> to vector<8x16xf32>
    %91 = arith.addf %88, %90 : vector<8x16xf32>
    %c168 = arith.constant 168 : index
    %c0_42 = arith.constant 0 : index
    %92 = vector.load %arg6[%c168, %c0_42] : memref<224x16xf32, #tpu.memory_space<vmem>>, vector<1x16xf32>
    %c176 = arith.constant 176 : index
    %c0_43 = arith.constant 0 : index
    %93 = vector.load %arg6[%c176, %c0_43] : memref<224x16xf32, #tpu.memory_space<vmem>>, vector<1x16xf32>
    %cst_44 = arith.constant dense<0.000000e+00> : vector<8xf32>
    %94 = vector.multi_reduction <add>, %91, %cst_44 [1] : vector<8x16xf32> to vector<8xf32>
    %95 = vector.shape_cast %94 : vector<8xf32> to vector<8x1xf32>
    %cst_45 = arith.constant 1.600000e+01 : f32
    %96 = vector.broadcast %cst_45 : f32 to vector<8x1xf32>
    %97 = arith.divf %95, %96 : vector<8x1xf32>
    %98 = vector.broadcast %97 : vector<8x1xf32> to vector<8x16xf32>
    %99 = arith.subf %91, %98 : vector<8x16xf32>
    %100 = arith.mulf %99, %99 : vector<8x16xf32>
    %cst_46 = arith.constant dense<0.000000e+00> : vector<8xf32>
    %101 = vector.multi_reduction <add>, %100, %cst_46 [1] : vector<8x16xf32> to vector<8xf32>
    %102 = vector.shape_cast %101 : vector<8xf32> to vector<8x1xf32>
    %cst_47 = arith.constant 1.600000e+01 : f32
    %103 = vector.broadcast %cst_47 : f32 to vector<8x1xf32>
    %104 = arith.divf %102, %103 : vector<8x1xf32>
    %105 = vector.broadcast %97 : vector<8x1xf32> to vector<8x16xf32>
    %106 = arith.subf %91, %105 : vector<8x16xf32>
    %cst_48 = arith.constant 9.99999974E-6 : f32
    %107 = vector.broadcast %cst_48 : f32 to vector<8x1xf32>
    %108 = arith.addf %104, %107 : vector<8x1xf32>
    %109 = math.rsqrt %108 : vector<8x1xf32>
    %110 = vector.broadcast %109 : vector<8x1xf32> to vector<8x16xf32>
    %111 = arith.mulf %106, %110 : vector<8x16xf32>
    %112 = vector.broadcast %92 : vector<1x16xf32> to vector<8x16xf32>
    %113 = arith.mulf %111, %112 : vector<8x16xf32>
    %114 = vector.broadcast %93 : vector<1x16xf32> to vector<8x16xf32>
    %115 = arith.addf %113, %114 : vector<8x16xf32>
    %cst_49 = arith.constant 0.000000e+00 : f32
    %116 = vector.broadcast %cst_49 : f32 to vector<8x16xf32>
    %117 = arith.maximumf %115, %116 : vector<8x16xf32>
    %c80 = arith.constant 80 : index
    %c0_50 = arith.constant 0 : index
    %118 = vector.load %arg6[%c80, %c0_50] : memref<224x16xf32, #tpu.memory_space<vmem>>, vector<16x16xf32>
    %cst_51 = arith.constant dense<0.000000e+00> : vector<8x16xf32>
    %119 = tpu.matmul %117, %118, %cst_51 {dimension_numbers = #tpu.dot_dimension_numbers<[1], [0], [0], [1], [0, 0, 1, 1], [], []>} : vector<8x16xf32>, vector<16x16xf32>, vector<8x16xf32> -> vector<8x16xf32>
    %c184 = arith.constant 184 : index
    %c0_52 = arith.constant 0 : index
    %120 = vector.load %arg6[%c184, %c0_52] : memref<224x16xf32, #tpu.memory_space<vmem>>, vector<1x16xf32>
    %121 = vector.broadcast %120 : vector<1x16xf32> to vector<8x16xf32>
    %122 = arith.addf %119, %121 : vector<8x16xf32>
    %c192 = arith.constant 192 : index
    %c0_53 = arith.constant 0 : index
    %123 = vector.load %arg6[%c192, %c0_53] : memref<224x16xf32, #tpu.memory_space<vmem>>, vector<1x16xf32>
    %c200 = arith.constant 200 : index
    %c0_54 = arith.constant 0 : index
    %124 = vector.load %arg6[%c200, %c0_54] : memref<224x16xf32, #tpu.memory_space<vmem>>, vector<1x16xf32>
    %cst_55 = arith.constant dense<0.000000e+00> : vector<8xf32>
    %125 = vector.multi_reduction <add>, %122, %cst_55 [1] : vector<8x16xf32> to vector<8xf32>
    %126 = vector.shape_cast %125 : vector<8xf32> to vector<8x1xf32>
    %cst_56 = arith.constant 1.600000e+01 : f32
    %127 = vector.broadcast %cst_56 : f32 to vector<8x1xf32>
    %128 = arith.divf %126, %127 : vector<8x1xf32>
    %129 = vector.broadcast %128 : vector<8x1xf32> to vector<8x16xf32>
    %130 = arith.subf %122, %129 : vector<8x16xf32>
    %131 = arith.mulf %130, %130 : vector<8x16xf32>
    %cst_57 = arith.constant dense<0.000000e+00> : vector<8xf32>
    %132 = vector.multi_reduction <add>, %131, %cst_57 [1] : vector<8x16xf32> to vector<8xf32>
    %133 = vector.shape_cast %132 : vector<8xf32> to vector<8x1xf32>
    %cst_58 = arith.constant 1.600000e+01 : f32
    %134 = vector.broadcast %cst_58 : f32 to vector<8x1xf32>
    %135 = arith.divf %133, %134 : vector<8x1xf32>
    %136 = vector.broadcast %128 : vector<8x1xf32> to vector<8x16xf32>
    %137 = arith.subf %122, %136 : vector<8x16xf32>
    %cst_59 = arith.constant 9.99999974E-6 : f32
    %138 = vector.broadcast %cst_59 : f32 to vector<8x1xf32>
    %139 = arith.addf %135, %138 : vector<8x1xf32>
    %140 = math.rsqrt %139 : vector<8x1xf32>
    %141 = vector.broadcast %140 : vector<8x1xf32> to vector<8x16xf32>
    %142 = arith.mulf %137, %141 : vector<8x16xf32>
    %143 = vector.broadcast %123 : vector<1x16xf32> to vector<8x16xf32>
    %144 = arith.mulf %142, %143 : vector<8x16xf32>
    %145 = vector.broadcast %124 : vector<1x16xf32> to vector<8x16xf32>
    %146 = arith.addf %144, %145 : vector<8x16xf32>
    %cst_60 = arith.constant 0.000000e+00 : f32
    %147 = vector.broadcast %cst_60 : f32 to vector<8x16xf32>
    %148 = arith.maximumf %146, %147 : vector<8x16xf32>
    %149 = arith.addf %148, %86 : vector<8x16xf32>
    %c208 = arith.constant 208 : index
    %c0_61 = arith.constant 0 : index
    %150 = vector.load %arg6[%c208, %c0_61] : memref<224x16xf32, #tpu.memory_space<vmem>>, vector<1x16xf32>
    %c216 = arith.constant 216 : index
    %c0_62 = arith.constant 0 : index
    %151 = vector.load %arg6[%c216, %c0_62] : memref<224x16xf32, #tpu.memory_space<vmem>>, vector<1x16xf32>
    %cst_63 = arith.constant dense<0.000000e+00> : vector<8xf32>
    %152 = vector.multi_reduction <add>, %149, %cst_63 [1] : vector<8x16xf32> to vector<8xf32>
    %153 = vector.shape_cast %152 : vector<8xf32> to vector<8x1xf32>
    %cst_64 = arith.constant 1.600000e+01 : f32
    %154 = vector.broadcast %cst_64 : f32 to vector<8x1xf32>
    %155 = arith.divf %153, %154 : vector<8x1xf32>
    %156 = vector.broadcast %155 : vector<8x1xf32> to vector<8x16xf32>
    %157 = arith.subf %149, %156 : vector<8x16xf32>
    %158 = arith.mulf %157, %157 : vector<8x16xf32>
    %cst_65 = arith.constant dense<0.000000e+00> : vector<8xf32>
    %159 = vector.multi_reduction <add>, %158, %cst_65 [1] : vector<8x16xf32> to vector<8xf32>
    %160 = vector.shape_cast %159 : vector<8xf32> to vector<8x1xf32>
    %cst_66 = arith.constant 1.600000e+01 : f32
    %161 = vector.broadcast %cst_66 : f32 to vector<8x1xf32>
    %162 = arith.divf %160, %161 : vector<8x1xf32>
    %163 = vector.broadcast %155 : vector<8x1xf32> to vector<8x16xf32>
    %164 = arith.subf %149, %163 : vector<8x16xf32>
    %cst_67 = arith.constant 9.99999974E-6 : f32
    %165 = vector.broadcast %cst_67 : f32 to vector<8x1xf32>
    %166 = arith.addf %162, %165 : vector<8x1xf32>
    %167 = math.rsqrt %166 : vector<8x1xf32>
    %168 = vector.broadcast %167 : vector<8x1xf32> to vector<8x16xf32>
    %169 = arith.mulf %164, %168 : vector<8x16xf32>
    %170 = vector.broadcast %150 : vector<1x16xf32> to vector<8x16xf32>
    %171 = arith.mulf %169, %170 : vector<8x16xf32>
    %172 = vector.broadcast %151 : vector<1x16xf32> to vector<8x16xf32>
    %173 = arith.addf %171, %172 : vector<8x16xf32>
    %174 = vector.shape_cast %173 : vector<8x16xf32> to vector<1x8x16xf32>
    %c0_68 = arith.constant 0 : index
    %c0_69 = arith.constant 0 : index
    %c0_70 = arith.constant 0 : index
    %175 = vector.load %arg7[%c0_68, %c0_69, %c0_70] : memref<1x8x16xf32, #tpu.memory_space<vmem>>, vector<1x8x16xf32>
    tpu.vector_store %arg7[%c0_68, %c0_69, %c0_70], %174 {strides = array<i32>} : memref<1x8x16xf32, #tpu.memory_space<vmem>>, vector<1x8x16xf32>,
    return
  }
  func.func @transform_0(%arg0: i32) -> (i32, i32, i32) {
    %c0_i32 = arith.constant 0 : i32
    %c0_i32_0 = arith.constant 0 : i32
    %c0_i32_1 = arith.constant 0 : i32
    return %arg0, %c0_i32, %c0_i32_0 : i32, i32, i32
  }
  func.func @transform_1(%arg0: i32) -> (i32, i32, i32) {
    %c0_i32 = arith.constant 0 : i32
    %c0_i32_0 = arith.constant 0 : i32
    %c0_i32_1 = arith.constant 0 : i32
    return %arg0, %c0_i32, %c0_i32_0 : i32, i32, i32
  }
  func.func @transform_2(%arg0: i32) -> (i32, i32, i32) {
    %c0_i32 = arith.constant 0 : i32
    %c0_i32_0 = arith.constant 0 : i32
    %c0_i32_1 = arith.constant 0 : i32
    return %arg0, %c0_i32, %c0_i32_0 : i32, i32, i32
  }
  func.func @transform_3(%arg0: i32) -> (i32, i32) {
    %c0_i32 = arith.constant 0 : i32
    %c0_i32_0 = arith.constant 0 : i32
    %c0_i32_1 = arith.constant 0 : i32
    return %c0_i32, %c0_i32_0 : i32, i32
  }
  func.func @transform_4(%arg0: i32) -> (i32, i32, i32) {
    %c0_i32 = arith.constant 0 : i32
    %c0_i32_0 = arith.constant 0 : i32
    %c0_i32_1 = arith.constant 0 : i32
    return %arg0, %c0_i32, %c0_i32_0 : i32, i32, i32
  }
  func.func @transform_5(%arg0: i32) -> (i32, i32) {
    %c0_i32 = arith.constant 0 : i32
    %c0_i32_0 = arith.constant 0 : i32
    %c0_i32_1 = arith.constant 0 : i32
    return %c0_i32, %c0_i32_0 : i32, i32
  }
  func.func @transform_6(%arg0: i32) -> (i32, i32, i32) {
    %c0_i32 = arith.constant 0 : i32
    %c0_i32_0 = arith.constant 0 : i32
    %c0_i32_1 = arith.constant 0 : i32
    return %arg0, %c0_i32, %c0_i32_0 : i32, i32, i32
  }
}

</mosaic_0001>

<bundles_post_ra>
// kernel: tpu_custom_call.1
= control target key start
LH: loop header
LB: loop body
LE: loop exit
PB: predicated region body
PF: predicated region fallthrough
CT: control target
= control target key end

     0   :  { %11 = vsyncpa [#allocation3], 0  ;;  %s1720_s0 = inlined_call_operand.vmem [shape: f32[2,8,16], index: 0, kind: input, shape index: {}]   ;;  %s1721_s1 = inlined_call_operand.vmem [shape: f32[2,8,16], index: 1, kind: input, shape index: {}]   ;;  %s1722_s2 = inlined_call_operand.vmem [shape: f32[2,8,16], index: 2, kind: input, shape index: {}]   ;;  %s1723_s3 = inlined_call_operand.vmem [shape: f32[8,8], index: 3, kind: input, shape index: {}]   ;;  %s1724_s4 = inlined_call_operand.vmem [shape: f32[2,1,8], index: 4, kind: input, shape index: {}]   ;;  %s1725_s5 = inlined_call_operand.vmem [shape: f32[224,16], index: 5, kind: input, shape index: {}]   ;;  %s1726_s6 = inlined_call_operand.hbm [shape: f32[2,8,16], index: 6, kind: output, shape index: {}]  }
   0x1   :  { %13 = vsyncpa [#allocation3 + $0x1], 0  ;;  %s1470_s21 = smov 0   ;;  %s1472_s22 = smov 0  }
   0x2   :  { %s1474_s23 = smov 0   ;;  %s1476_s24 = smov 0  }
   0x3 LB: > { %s1491_s25 = sadd.s32 4294967295, %s1429_s24   ;;  %s1181_s26 = sadd.s32 4294967294, %s1429_s24   ;;  %s1429_s24 = sphi %s1476_s24, %s1732_s24   ;;  %s1425_s23 = sphi %s1474_s23, %s1731_s23   ;;  %s1421_s22 = sphi %s1472_s22, %s1730_s22   ;;  %s1417_s21 = sphi %s1470_s21, %s1729_s21  }
   0x4   : > { %s1495_s27 = sadd.s32 1, %s1429_s24   ;;  %s172_s28 = sadd.s32 1, %s1425_s23 }
   0x5   : > { %s169_s29 = ssub.s32 %s1429_s24, %s1495_s27  ;;  %p182_p0 = scmp.ne.s32.totalorder %s1425_s23, %s1421_s22 }
   0x6   : > { %p170_p1 = scmp.eq.s32.totalorder %s169_s29, 0  ;;  %p183_p2 = scmp.eq.s32.totalorder %s1491_s25, 1 }
   0x7   : > { %p188_p3 = scmp.ne.s32.totalorder %s1421_s22, %s1417_s21  ;;  %p189_p4 = scmp.eq.s32.totalorder %s1181_s26, 1 }
   0x8   : > { %s1506_s30 = scalar_select %p170_p1, %s1425_s23, %s172_s28  }
   0x9   : > { %p1508_p5 = por %p183_p2, %p182_p0  ;;  %p1512_p6 = por %p189_p4, %p188_p3 }
   0xa   : > { %p1184_p7 = scmp.ge.s32.totalorder %s1429_s24, 1  ;;  %p240_p8 = scmp.lt.s32.totalorder %s1429_s24, 3 }
   0xc   : > { %p241_p9 = pnand %p1184_p7, %p240_p8 }
   0xd   : > { %v379_v0 = vld [vmem:[%s1725_s5 + $0x10] sm:$0xff] (!%p241_p9)  ;;  %v380_v1 = vld [vmem:[%s1725_s5 + $0x18] sm:$0xff] (!%p241_p9)  ;;  %v298_v2 = vld [vmem:[%s1725_s5] sm:$0xff] (!%p241_p9)  ;;  %v1431_v3 = vmov (!%p241_p9), 0.0|0.0   ;;  %p280_p10 = scmp.lt.s32.totalorder (!%p241_p9), %s1491_s25, 1  ;;  %vm1432_vm0 = vmmov (!%p241_p9), 0  }
   0xe   : > { %244 = sbr.rel (%p241_p9) target bundleno = 2749 (0xabd), region = 44  ;;  %1296 = vmatprep.subr.bf16.mxu1 (!%p241_p9), %v1431_v3  ;;  %v1297_v4 = vpack.c.bf16 (!%p241_p9), %v380_v1, %v379_v0  ;;  %1293 = vmatprep.subr.bf16.mxu0 (!%p241_p9), %v1431_v3  ;;  %v299_v5 = vld [vmem:[%s1725_s5 + $0x8] sm:$0xff] (!%p241_p9)  ;;  %v1433_v6 = vmov (!%p241_p9), 0.0   ;;  %vm305_vm1 = vcmask (!%p241_p9), 130048   ;;  %v1189_v11 = vld [vmem:[%s1725_s5 + $0x60] ss:$0 sm:$0xff] (!%p241_p9) }
   0xf   : > { %1252 = vmatprep.mubr.msk.f32.mxu1 (!%p241_p9), %vm1432_vm0, %v1433_v6  ;;  %v1294_v7 = vpack.c.bf16 (!%p241_p9), %v299_v5, %v298_v2  ;;  %1245 = vmatprep.mubr.msk.f32.mxu0 (!%p241_p9), %vm1432_vm0, %v1433_v6  ;;  %v1191_v10 = vld [vmem:[%s1725_s5 + $0x68] ss:$0 sm:$0xff] (!%p241_p9)  ;;  %v1195_v14 = vld [vmem:[%s1725_s5 + $0x80] ss:$0 sm:$0xff] (!%p241_p9)  ;;  %vm633_vm2 = vcmask (!%p241_p9), 64512   ;;  %v729_v44 = vld [vmem:[%s1725_s5 + $0x30] sm:$0xff] (!%p241_p9) }
  0x10   : > { %1298 = vmatpush3.bf16.msra.mxu1 (!%p241_p9), %v1297_v4  ;;  %v459_v21 = vld [vmem:[%s1725_s5 + $0x20] sm:$0xff] (!%p241_p9)  ;;  %v460_v22 = vld [vmem:[%s1725_s5 + $0x28] sm:$0xff] (!%p241_p9)  ;;  %v1193_v32 = vld [vmem:[%s1725_s5 + $0x70] ss:$0 sm:$0xff] (!%p241_p9)  ;;  %s277_s19 = sand.u32 (!%p241_p9), 1, %s1421_s22   ;;  %s1216_s10 = sshll.u32 (!%p241_p9), %s1491_s25, 7 }
  0x11   : > { %1295 = vmatpush3.bf16.msra.mxu0 (!%p241_p9), %v1294_v7  ;;  %1262 = vmatprep.subr.mxu1 (!%p241_p9), %v1433_v6  ;;  %v1300_v23 = vpack.c.bf16 (!%p241_p9), %v460_v22, %v459_v21  ;;  %v548_v25 = vld [vmem:[%s1723_s3] sm:$0xff] (!%p241_p9)  ;;  %v730_v45 = vld [vmem:[%s1725_s5 + $0x38] sm:$0xff] (!%p241_p9)  ;;  %v1199_v51 = vld [vmem:[%s1725_s5 + $0x88] ss:$0 sm:$0xff] (!%p241_p9)  ;;  %s1185_s20 = sshll.u32 (!%p241_p9), %s277_s19, 3  ;;  %s1076_s15 = scalar_lea.sflag (!%p241_p9), [#allocation3], %s277_s19 }
  0x12   : > { %1299 = vmatprep.subr.bf16.mxu0 (!%p241_p9), %v1431_v3  ;;  %v1303_v46 = vpack.c.bf16 (!%p241_p9), %v730_v45, %v729_v44  ;;  %v1201_v58 = vld [vmem:[%s1725_s5 + $0x78] ss:$0 sm:$0xff] (!%p241_p9)  ;;  %v836_v5 = vld [vmem:[%s1725_s5 + $0x40] sm:$0xff] (!%p241_p9)  ;;  %s279_s11 = scalar_lea.vmem (!%p241_p9), [#allocation2], %s1185_s20 }
  0x15   : > { %s1538_s17 = scalar_select %p280_p10, %s1491_s25, 1 }
  0x16   : > { %s1434_s25 = smov [#allocation2]  }
  0x17   : > { %s1542_s18 = sshll.u32 %s1538_s17, 3  ;;  %s294_s12 = scalar_lea.vmem %s1724_s4, %s1538_s17 }
  0x18   : > { %s287_s26 = scalar_lea.vmem %s1721_s1, %s1542_s18  ;;  %s283_s9 = scalar_lea.vmem %s1720_s0, %s1542_s18  ;;  %v1196_v26 = vld [vmem:[%s294_s12] ss:$0 sm:$0xff] }
  0x19   : > { %v296_v8 = vld [vmem:[%s287_s26] sm:$0xff]  ;;  %v556_v27 = vadd.f32 %v1196_v26, %v548_v25  ;;  %s1089_s12 = sshll.u32 %s279_s11, 4  ;;  %s1371_s16 = sshll.u32 %s1434_s25, 4  ;;  %s1679_s12 = int_to_ptr.vmem [resolvable:$true] %s1089_s12  ;;  %s1372_s16 = int_to_ptr.vmem [resolvable:$false] %s1371_s16 }
  0x1a   : > { %v295_v9 = vld [vmem:[%s283_s9] sm:$0xff]  ;;  %1253 = vmatmul.mubr.msk.f32.vlgmr.msra.gmra.mrb[0].mxu1 %vm305_vm1, %v296_v8  ;;  %s291_s9 = scalar_lea.vmem %s1722_s2, %s1542_s18  ;;  %s1677_s18 = scalar_lea.hbm %s1726_s6, %s1216_s10 }
  0x1b   : > { %1246 = vmatmul.mubr.msk.f32.vlgmr.msra.gmra.mrb[0].mxu0 %vm305_vm1, %v295_v9  ;;  %1264 = vmatprep.mubr.msk.f32.mxu1 %vm1432_vm0, %v1433_v6  ;;  %v297_v24 = vld [vmem:[%s291_s9] sm:$0xff]  ;;  %s1367_s17 = scalar_lea.vmem %s1679_s12, 128  ;;  %s1373_s20 = scalar_lea.vmem %s1372_s16, 256 }
  0x1c   : > { %1259 = vmatprep.mubr.msk.f32.mxu0 %vm1432_vm0, %v1433_v6  ;;  %1301 = vmatpush3.bf16.msra.mxu0 %v1300_v23  ;;  %p1368_p11 = scmp.ne.s32.totalorder %s1679_s12, %s1367_s17  ;;  %p1374_p0 = scmp.lt.s32.totalorder %s1679_s12, %s1372_s16 }
  0x1d   : > { %1267 = vmatprep.subr.mxu0 %v1433_v6  ;;  %p1375_p1 = scmp.lt.s32.totalorder %s1373_s20, %s1367_s17 }
  0x1e   : > { %p1369_p12 = pnand %p1368_p11, %p1508_p5 }
  0x1f   : > { %1260 = vmatmul.mubr.msk.f32.vlgmr.msra.gmra.mrb[2].mxu0 %vm305_vm1, %v297_v24  ;;  %p1376_p2 = por %p1375_p1, %p1374_p0 }
  0x20   : > { %1269 = vmatprep.mubr.msk.f32.mxu0 %vm1432_vm0, %v1433_v6  ;;  %p1370_p13 = pneg %p1369_p12 }
  0x22   : > { %p1377_p3 = pnand %p1376_p2, %p1370_p13 }
  0xed   : > { %v455_v12 = vpop.f32.mrb[0].mxu1 }
  0xee   : > { %v375_v13 = vpop.f32.mrb[0].mxu0  ;;  %v456_v15 = vadd.f32 %v1191_v10, %v455_v12  ;;  %v1254_v16 = vpop.f32.mrb[1].mxu1  ;;  %v1203_v12 = vld [vmem:[%s1725_s5 + $0x90] ss:$0 sm:$0xff] }
  0xef   : > { %v376_v17 = vadd.f32 %v1189_v11, %v375_v13  ;;  %v1247_v18 = vpop.f32.mrb[1].mxu0 }
  0xf0   : > { %1263 = vmatpush3.xpose.msk.msra.mxu1 %vm305_vm1, %v456_v15 }
  0xf1   : > { %v544_v19 = vmul.f32 %v1195_v14, %v376_v17  ;;  %1302 = vmatprep.subr.bf16.mxu1 %v1431_v3  ;;  %v1204_v14 = vld [vmem:[%s1725_s5 + $0x98] ss:$0 sm:$0xff] }
  0xf2   : > { %v535_v33 = vpop.f32.mrb[2].mxu0 }
  0xf3   : > { %v545_v20 = vsel %vm305_vm1, %v544_v19, 0.0  ;;  %1265 = vmatmul.mubr.msk.f32.vlgmr.msra.gmra.mrb[2].mxu1 %vm305_vm1, %v376_v17  ;;  %v536_v34 = vadd.f32 %v1193_v32, %v535_v33  ;;  %v1261_v35 = vpop.f32.mrb[3].mxu0  ;;  %v1205_v17 = vld [vmem:[%s1725_s5 + $0xa0] ss:$0 sm:$0xff] }
  0xf4   : > { %546 = vadd.xlane.f32.xlu0 %v545_v20  ;;  %1276 = vmatprep.mubr.msk.f32.mxu1 %vm1432_vm0, %v1433_v6 }
  0xf5   : > { %1268 = vmatpush3.msra.mxu0 %v536_v34  ;;  %1304 = vmatpush3.bf16.msra.mxu1 %v1303_v46  ;;  %v1207_v34 = vld [vmem:[%s1725_s5 + $0xa8] ss:$0 sm:$0xff] }
  0xf6   : > { %1305 = vmatprep.subr.bf16.mxu0 %v1431_v3  ;;  %1308 = vmatprep.subr.bf16.mxu1 %v1431_v3 }
 0x181   : > { %v547_v36 = vpop.xlane.xlu0 %546 }
 0x1c6   : > { %v629_v28 = vpop.f32.mrb[2].mxu1 }
 0x1c7   : > { %v630_v29 = vadd.f32 %v629_v28, %v556_v27  ;;  %v1266_v30 = vpop.f32.mrb[3].mxu1  ;;  %v942_v27 = vld [vmem:[%s1725_s5 + $0x50] sm:$0xff]  ;;  %v943_v28 = vld [vmem:[%s1725_s5 + $0x58] sm:$0xff] }
 0x1c9   : > { %v634_v31 = vsel %vm633_vm2, %v630_v29, -inf }
 0x1ca   : > { %635 = vmax.xlane.f32.xlu0 %v634_v31 }
 0x257   : > { %v636_v37 = vpop.xlane.xlu0 %635 }
 0x258   : > { %v637_v38 = vmax.f32 %v636_v37, %v547_v36 }
 0x25a   : > { %v638_v39 = vsub.f32 %v630_v29, %v637_v38  ;;  %v641_v40 = vsub.f32 %v547_v36, %v637_v38  ;;  %v1309_v29 = vpack.c.bf16 %v943_v28, %v942_v27  ;;  %v1208_v36 = vld [vmem:[%s1725_s5 + $0xb0] ss:$0 sm:$0xff] }
 0x25c   : > { %v639_v41 = vmul.f32 1.442695, %v638_v39  ;;  %v642_v47 = vmul.f32 1.442695, %v641_v40  ;;  %v1209_v40 = vld [vmem:[%s1725_s5 + $0xb8] ss:$0 sm:$0xff] }
 0x25e   : > { %1353 = vpow2.f32 %v639_v41 }
 0x25f   : > { %1355 = vpow2.f32 %v642_v47 }
 0x268   : > { %v1354_v42 = vpop.eup %1353 }
 0x269   : > { %1270 = vmatmul.mubr.msk.f32.vlgmr.msra.gmra.mrb[4].mxu0 %vm633_vm2, %v1354_v42  ;;  %v644_v43 = vsel %vm633_vm2, %v1354_v42, 0.0  ;;  %v1356_v49 = vpop.eup %1355 }
 0x26a   : > { %645 = vadd.xlane.f32.xlu1 %v644_v43  ;;  %1283 = vmatprep.mubr.msk.f32.mxu0 %vm1432_vm0, %v1433_v6  ;;  %v653_v52 = vmul.f32 %v1356_v49, %v1199_v51 }
 0x2f7   : > { %v646_v48 = vpop.xlane.xlu1 %645 }
 0x2f8   : > { %v647_v50 = vadd.f32 %v1356_v49, %v646_v48 }
 0x2fa   : > { %1357 = vrcp.f32 %v647_v50 }
 0x304   : > { %v1358_v56 = vpop.eup %1357 }
 0x33c   : > { %v723_v53 = vpop.f32.mrb[4].mxu0 }
 0x33d   : > { %v724_v54 = vadd.f32 %v723_v53, %v653_v52  ;;  %v1271_v55 = vpop.f32.mrb[5].mxu0 }
 0x33f   : > { %v728_v57 = vmul.f32 %v1358_v56, %v724_v54  ;;  %v1211_v54 = vld [vmem:[%s1725_s5 + $0xc0] ss:$0 sm:$0xff]  ;;  %v1212_v56 = vld [vmem:[%s1725_s5 + $0xc8] ss:$0 sm:$0xff] }
 0x341   : > { %1277 = vmatmul.mubr.msk.f32.vlgmr.msra.gmra.mrb[4].mxu1 %vm305_vm1, %v728_v57 }
 0x342   : > { %1290 = vmatprep.mubr.msk.f32.mxu1 %vm1432_vm0, %v1433_v6  ;;  %v837_v6 = vld [vmem:[%s1725_s5 + $0x48] sm:$0xff]  ;;  %1310 = vmatpush3.bf16.msra.mxu1 %v1309_v29 }
 0x343   : > { %v1306_v7 = vpack.c.bf16 %v837_v6, %v836_v5 }
 0x345   : > { %1307 = vmatpush3.bf16.msra.mxu0 %v1306_v7  ;;  %v1213_v7 = vld [vmem:[%s1725_s5 + $0xd0] ss:$0 sm:$0xff] }
 0x414   : > { %v805_v59 = vpop.f32.mrb[4].mxu1 }
 0x415   : > { %v806_v60 = vadd.f32 %v1201_v58, %v805_v59  ;;  %v1278_v61 = vpop.f32.mrb[5].mxu1 }
 0x417   : > { %v809_v62 = vadd.f32 %v806_v60, %v297_v24 }
 0x419   : > { %v812_v63 = vsel %vm305_vm1, %v809_v62, 0.0 }
 0x41a   : > { %813 = vadd.xlane.f32.xlu1 %v812_v63 }
 0x4a7   : > { %v814_v0 = vpop.xlane.xlu1 %813 }
 0x4a8   : > { %v816_v1 = vmul.f32 0.0625, %v814_v0 }
 0x4aa   : > { %v817_v2 = vsub.f32 %v809_v62, %v816_v1 }
 0x4ac   : > { %v818_v3 = vmul.f32 %v817_v2, %v817_v2 }
 0x4ae   : > { %v819_v4 = vsel %vm305_vm1, %v818_v3, 0.0 }
 0x4af   : > { %820 = vadd.xlane.f32.xlu0 %v819_v4 }
 0x53c   : > { %v821_v8 = vpop.xlane.xlu0 %820 }
 0x53d   : > { %v822_v9 = vmul.f32 0.0625, %v821_v8 }
 0x53f   : > { %v823_v10 = vadd.f32 1e-05, %v822_v9  ;;  %v1214_v9 = vld [vmem:[%s1725_s5 + $0xd8] ss:$0 sm:$0xff] }
 0x541   : > { %1359 = vrsqrt.f32 %v823_v10 }
 0x54b   : > { %v1360_v11 = vpop.eup %1359 }
 0x54c   : > { %v825_v13 = vmul.f32 %v1360_v11, %v817_v2 }
 0x54e   : > { %v830_v15 = vmul.f32 %v1203_v12, %v825_v13 }
 0x550   : > { %v835_v16 = vadd.f32 %v1204_v14, %v830_v15 }
 0x552   : > { %1284 = vmatmul.mubr.msk.f32.vlgmr.msra.gmra.mrb[6].mxu0 %vm305_vm1, %v835_v16 }
 0x625   : > { %v912_v18 = vpop.f32.mrb[6].mxu0 }
 0x626   : > { %v913_v19 = vadd.f32 %v1205_v17, %v912_v18  ;;  %v1285_v20 = vpop.f32.mrb[7].mxu0 }
 0x628   : > { %v918_v21 = vsel %vm305_vm1, %v913_v19, 0.0 }
 0x629   : > { %919 = vadd.xlane.f32.xlu1 %v918_v21 }
 0x6b6   : > { %v920_v22 = vpop.xlane.xlu1 %919 }
 0x6b7   : > { %v921_v23 = vmul.f32 0.0625, %v920_v22 }
 0x6b9   : > { %v922_v24 = vsub.f32 %v913_v19, %v921_v23 }
 0x6bb   : > { %v923_v25 = vmul.f32 %v922_v24, %v922_v24 }
 0x6bd   : > { %v924_v26 = vsel %vm305_vm1, %v923_v25, 0.0 }
 0x6be   : > { %925 = vadd.xlane.f32.xlu0 %v924_v26 }
 0x74b   : > { %v926_v30 = vpop.xlane.xlu0 %925 }
 0x74c   : > { %v927_v31 = vmul.f32 0.0625, %v926_v30 }
 0x74e   : > { %v928_v32 = vadd.f32 1e-05, %v927_v31 }
 0x750   : > { %1361 = vrsqrt.f32 %v928_v32 }
 0x75a   : > { %v1362_v33 = vpop.eup %1361 }
 0x75b   : > { %v930_v35 = vmul.f32 %v1362_v33, %v922_v24 }
 0x75d   : > { %v935_v37 = vmul.f32 %v1207_v34, %v930_v35 }
 0x75f   : > { %v940_v38 = vadd.f32 %v1208_v36, %v935_v37 }
 0x761   : > { %v941_v39 = vmax.f32 %v940_v38, 0.0 }
 0x763   : > { %1291 = vmatmul.mubr.msk.f32.vlgmr.msra.gmra.mrb[6].mxu1 %vm305_vm1, %v941_v39 }
 0x836   : > { %v1018_v41 = vpop.f32.mrb[6].mxu1 }
 0x837   : > { %v1019_v42 = vadd.f32 %v1209_v40, %v1018_v41  ;;  %v1292_v43 = vpop.f32.mrb[7].mxu1 }
 0x839   : > { %v1024_v44 = vsel %vm305_vm1, %v1019_v42, 0.0 }
 0x83a   : > { %1025 = vadd.xlane.f32.xlu1 %v1024_v44 }
 0x8c7   : > { %v1026_v45 = vpop.xlane.xlu1 %1025 }
 0x8c8   : > { %v1027_v46 = vmul.f32 0.0625, %v1026_v45 }
 0x8ca   : > { %v1028_v47 = vsub.f32 %v1019_v42, %v1027_v46 }
 0x8cc   : > { %v1029_v48 = vmul.f32 %v1028_v47, %v1028_v47 }
 0x8ce   : > { %v1030_v49 = vsel %vm305_vm1, %v1029_v48, 0.0 }
 0x8cf   : > { %1031 = vadd.xlane.f32.xlu0 %v1030_v49 }
 0x95c   : > { %v1032_v50 = vpop.xlane.xlu0 %1031 }
 0x95d   : > { %v1033_v51 = vmul.f32 0.0625, %v1032_v50 }
 0x95f   : > { %v1034_v52 = vadd.f32 1e-05, %v1033_v51 }
 0x961   : > { %1363 = vrsqrt.f32 %v1034_v52 }
 0x96b   : > { %v1364_v53 = vpop.eup %1363 }
 0x96c   : > { %v1036_v55 = vmul.f32 %v1364_v53, %v1028_v47 }
 0x96e   : > { %v1041_v57 = vmul.f32 %v1211_v54, %v1036_v55 }
 0x970   : > { %v1046_v58 = vadd.f32 %v1212_v56, %v1041_v57 }
 0x972   : > { %v1047_v59 = vmax.f32 %v1046_v58, 0.0 }
 0x974   : > { %v1048_v60 = vadd.f32 %v1047_v59, %v835_v16 }
 0x976   : > { %v1051_v61 = vsel %vm305_vm1, %v1048_v60, 0.0 }
 0x977   : > { %1052 = vadd.xlane.f32.xlu1 %v1051_v61 }
 0xa04   : > { %v1053_v62 = vpop.xlane.xlu1 %1052 }
 0xa05   : > { %v1054_v63 = vmul.f32 0.0625, %v1053_v62 }
 0xa07   : > { %v1055_v0 = vsub.f32 %v1048_v60, %v1054_v63 }
 0xa09   : > { %v1056_v1 = vmul.f32 %v1055_v0, %v1055_v0 }
 0xa0b   : > { %v1057_v2 = vsel %vm305_vm1, %v1056_v1, 0.0 }
 0xa0c   : > { %1058 = vadd.xlane.f32.xlu0 %v1057_v2 }
 0xa99   : > { %v1059_v3 = vpop.xlane.xlu0 %1058 }
 0xa9a   : > { %v1060_v4 = vmul.f32 0.0625, %v1059_v3 }
 0xa9c   : > { %v1061_v5 = vadd.f32 1e-05, %v1060_v4 }
 0xa9e   : > { %1365 = vrsqrt.f32 %v1061_v5 }
 0xaa8   : > { %v1366_v6 = vpop.eup %1365 }
 0xaa9   : > { %v1063_v8 = vmul.f32 %v1366_v6, %v1055_v0 }
 0xaab   : > { %v1068_v10 = vmul.f32 %v1213_v7, %v1063_v8 }
 0xaad   : > { %v1073_v11 = vadd.f32 %v1214_v9, %v1068_v10 }
 0xaaf   : > { %1074 = vst.msk [vmem:[%s279_s11] sm:$0xff] %vm305_vm1, %v1073_v11 }
 0xab0   : > { %1380 = shalt.err (!%p1377_p3)
}
 0xab1   : > { %s1381_s19 = scalar_lea.hbm %s1677_s18, 128  ;;  %s1385_s29 = scalar_lea.hbm %s1726_s6, 256 }
 0xab2   : > { %p1382_p4 = scmp.ne.s32.totalorder %s1677_s18, %s1381_s19  ;;  %p1386_p9 = scmp.lt.u32.totalorder %s1677_s18, %s1726_s6 }
 0xab3   : > { %p1387_p10 = scmp.lt.u32.totalorder %s1385_s29, %s1381_s19  ;;  %p1389_p12 = scmp.lt.u32.totalorder %s1381_s19, %s1677_s18 }
 0xab4   : > { %p1383_p7 = pnand %p1382_p4, %p1508_p5 }
 0xab5   : > { %p1388_p11 = por %p1387_p10, %p1386_p9 }
 0xab6   : > { %p1384_p8 = pneg %p1383_p7 }
 0xab7   : > { %p1390_p13 = por %p1389_p12, %p1388_p11 }
 0xab9   : > { %p1391_p0 = pnand %p1390_p13, %p1384_p8 }
 0xabb   : > { %1394 = shalt.err (!%p1391_p0)
}
 0xabc   : > { %1311 = dma.vmem_to_hbm [thread:$0]  (%p1508_p5), %s1679_s12, 128, %s1677_s18, %s1076_s15  }
 0xabd PF: > { %p1317_p1 = scmp.ge.s32.totalorder %s1429_s24, 2  ;;  %s1101_s11 = sand.u32 1, %s1417_s21  }
 0xabe   : > { %s1102_s13 = scalar_lea.sflag [#allocation3], %s1101_s11 }
 0xabf   : > { %p1314_p2 = pnand %p1317_p1, %p1512_p6 }
 0xac1   : > { %1412 = dma.done.wait (!%p1314_p2), %s1102_s13, 128  }
 0xac2   : > { %1414 = vsyncadd (!%p1314_p2), %s1102_s13, 4294967168  ;;  %p16_p3 = scmp.ge.s32.totalorder %s1495_s27, 4   ;;  %s1729_s21 = smov %s1421_s22 }
 0xac3   : > { %s1730_s22 = smov %s1425_s23  ;;  %s1731_s23 = smov %s1506_s30 }
 0xac4   : > { %s1732_s24 = smov %s1495_s27  ;;  %18 = sbr.rel (!%p16_p3) target bundleno = 3 (0x3), region = 88 }
 0xacb   :  { %1107 = vsyncpa [#allocation3], 1 }
 0xacc   :  { %1109 = vsyncpa [#allocation3 + $0x1], 1 }

</bundles_post_ra>
